<compile_context>
chip_gen: v6e
topology: v6e:2x2x1
jax: 0.10.0
libtpu: 0.0.40
codegen_flags: <defaults>
</compile_context>

<pallas_src>
import functools
import math

import jax
import jax.numpy as jnp
import numpy as np
from jax.experimental import pallas as pl
from jax.experimental.pallas import tpu as pltpu


# ----------------------------------------------------------------------------
# Pallas kernel: per grid step (= one parameter set) it
#   1) builds the camera matrix rows on the scalar unit,
#   2) blends the 68 (padded to 128) landmark vertices with ONE MXU dot,
#   3) projects + perspective-divides on the VPU/EUP,
#   4) optionally applies BatchNorm1d(2) with a masked cross-lane reduce.
# ----------------------------------------------------------------------------
def _landmark_project_kernel(scal_ref,   # SMEM (B, 12): [a, d, cx, cy, cz, sx, sy, sz, tx, ty, tz, 0]
                             sig2_ref,   # VMEM (2, Kpad): row0 = sig_id|0, row1 = 0|sig_exp
                             basis_ref,  # VMEM (Kpad, 3*Lpad): stacked [E_id; E_exp] landmark cols
                             mu_ref,     # VMEM (1, 3*Lpad)
                             out_ref,    # VMEM (2, Lpad): rows (u, v)
                             *, vp, n_lm, normalised):
    lp = out_ref.shape[1]
    b = pl.program_id(0)

    alpha = scal_ref[b, 0]
    delta = scal_ref[b, 1]
    cx = scal_ref[b, 2]
    cy = scal_ref[b, 3]
    cz = scal_ref[b, 4]
    sx = scal_ref[b, 5]
    sy = scal_ref[b, 6]
    sz = scal_ref[b, 7]
    tx = scal_ref[b, 8]
    ty = scal_ref[b, 9]
    tz = scal_ref[b, 10]

    # R = Rz @ Ry @ Rx composed with scalar-unit arithmetic (no XLA matmuls).
    # TODO(synk): original get_projection source unavailable; Euler angles in
    # degrees with R = Rz @ Ry @ Rx is assumed (matches the in-script reference).
    r00 = cz * cy
    r01 = cz * sy * sx - sz * cx
    r02 = cz * sy * cx + sz * sx
    r10 = sz * cy
    r11 = sz * sy * sx + cz * cx
    r12 = sz * sy * cx - cz * sx
    r20 = -sy
    r21 = cy * sx
    r22 = cy * cx
    R = ((r00, r01, r02), (r10, r11, r12), (r20, r21, r22))

    # Rows 0 (u), 1 (v), 3 (w) of M = VP @ [R | tau; 0 0 0 1]; VP entries are
    # compile-time Python-float constants.
    def m_row(a):
        v0, v1, v2, v3 = vp[4 * a], vp[4 * a + 1], vp[4 * a + 2], vp[4 * a + 3]
        m0 = v0 * R[0][0] + v1 * R[1][0] + v2 * R[2][0]
        m1 = v0 * R[0][1] + v1 * R[1][1] + v2 * R[2][1]
        m2 = v0 * R[0][2] + v1 * R[1][2] + v2 * R[2][2]
        m3 = v0 * tx + v1 * ty + v2 * tz + v3
        return m0, m1, m2, m3

    # generate_point_cloud (landmark columns only), single fused MXU dot:
    #   G = mu + [alpha*sig_id | delta*sig_exp] @ [E_id ; E_exp]
    coeff = alpha * sig2_ref[0:1, :] + delta * sig2_ref[1:2, :]        # (1, Kpad)
    g = mu_ref[...] + jnp.dot(coeff, basis_ref[...],
                              preferred_element_type=jnp.float32)      # (1, 3*Lpad)
    gx = g[:, 0:lp]              # lane-tile aligned slices (Lpad % 128 == 0)
    gy = g[:, lp:2 * lp]
    gz = g[:, 2 * lp:3 * lp]

    m00, m01, m02, m03 = m_row(0)
    m10, m11, m12, m13 = m_row(1)
    m30, m31, m32, m33 = m_row(3)

    u = m00 * gx + m01 * gy + m02 * gz + m03
    v = m10 * gx + m11 * gy + m12 * gz + m13
    w = m30 * gx + m31 * gy + m32 * gz + m33

    lane = jax.lax.broadcasted_iota(jnp.int32, (1, lp), 1)
    valid = lane < n_lm
    w = jnp.where(valid, w, jnp.float32(1.0))      # keep pad lanes finite
    inv_w = pl.reciprocal(w, approx=False)
    u = u * inv_w
    v = v * inv_w

    if normalised:
        # BatchNorm1d(2), training mode, gamma=1 beta=0, eps=1e-5, biased var,
        # computed with a masked 68-lane cross-lane reduction in-kernel.
        mask = valid.astype(jnp.float32)
        inv_n = jnp.float32(1.0 / n_lm)
        u = u * mask
        v = v * mask
        mean_u = jnp.sum(u, axis=-1, keepdims=True) * inv_n
        mean_v = jnp.sum(v, axis=-1, keepdims=True) * inv_n
        du = (u - mean_u) * mask
        dv = (v - mean_v) * mask
        var_u = jnp.sum(du * du, axis=-1, keepdims=True) * inv_n
        var_v = jnp.sum(dv * dv, axis=-1, keepdims=True) * inv_n
        eps = jnp.float32(1e-5)
        out_ref[0:1, :] = du * jax.lax.rsqrt(var_u + eps)
        out_ref[1:2, :] = dv * jax.lax.rsqrt(var_v + eps)
    else:
        out_ref[0:1, :] = u
        out_ref[1:2, :] = v


# ----------------------------------------------------------------------------
# Static model prep (replaces the h5py load): gather the 68 landmark columns,
# fuse the two bases, lane-pad to 128, pad K to a multiple of 8.
# ----------------------------------------------------------------------------
def build_landmark_model(mu, eid, eex, sig_id, sig_ex, subset, l_pad=128):
    """mu (3,N), eid (Kid,3,N), eex (Kex,3,N) -> landmark-gathered, padded arrays."""
    n_lm = int(subset.shape[0])
    k_id = int(eid.shape[0])
    k_ex = int(eex.shape[0])
    k_tot = k_id + k_ex
    k_pad = -(-k_tot // 8) * 8

    def gather_pad_flatten(x):           # (..., 3, N) -> (..., 3*l_pad), coord-major
        g = x[..., subset]               # (..., 3, n_lm)
        pad = [(0, 0)] * (g.ndim - 1) + [(0, l_pad - n_lm)]
        g = jnp.pad(g, pad)              # (..., 3, l_pad)
        return g.reshape(*g.shape[:-2], 3 * l_pad)

    mu_lm = gather_pad_flatten(mu)[None, :]                      # (1, 3*l_pad)
    basis = jnp.concatenate([gather_pad_flatten(eid),
                             gather_pad_flatten(eex)], axis=0)   # (k_tot, 3*l_pad)
    basis = jnp.pad(basis, ((0, k_pad - k_tot), (0, 0)))         # (k_pad, 3*l_pad)

    sig2 = jnp.zeros((2, k_pad), jnp.float32)
    sig2 = sig2.at[0, :k_id].set(sig_id.astype(jnp.float32))
    sig2 = sig2.at[1, k_id:k_tot].set(sig_ex.astype(jnp.float32))

    return {
        "mu_lm": mu_lm.astype(jnp.float32),
        "basis_lm": basis.astype(jnp.float32),
        "sig2": sig2,
        "n_landmarks": n_lm,
    }


def build_viewport_perspective(picture_shape, fovy=0.5, near=300.0, far=2000.0):
    """Static Viewport @ Perspective 4x4 (numpy, computed once at build time)."""
    h, w = float(picture_shape[0]), float(picture_shape[1])
    aspect = w / h
    t = near * math.tan(fovy / 2.0)
    b, r, l = -t, t * aspect, -t * aspect
    n, f = near, far
    P = np.array(
        [[2 * n / (r - l), 0.0, (r + l) / (r - l), 0.0],
         [0.0, 2 * n / (t - b), (t + b) / (t - b), 0.0],
         [0.0, 0.0, -(f + n) / (f - n), -2 * f * n / (f - n)],
         [0.0, 0.0, -1.0, 0.0]], dtype=np.float64)
    V = np.array(
        [[w / 2.0, 0.0, 0.0, w / 2.0],
         [0.0, -h / 2.0, 0.0, h / 2.0],
         [0.0, 0.0, 0.5, 0.5],
         [0.0, 0.0, 0.0, 1.0]], dtype=np.float64)
    return (V @ P).astype(np.float32)


# ----------------------------------------------------------------------------
# Forward factory: returns a jitted batched forward (B parameter sets -> (B,68,2)).
# ----------------------------------------------------------------------------
def make_training_forward(bfm_lm, picture_shape, normalised=False,
                          fovy=0.5, near=300.0, far=2000.0):
    vp = build_viewport_perspective(picture_shape, fovy, near, far)
    vp_flat = tuple(float(x) for x in np.asarray(vp, np.float32).reshape(-1))
    n_lm = bfm_lm["n_landmarks"]
    lp = bfm_lm["mu_lm"].shape[1] // 3
    sig2 = bfm_lm["sig2"]
    basis = bfm_lm["basis_lm"]
    mu_lm = bfm_lm["mu_lm"]

    kernel = functools.partial(_landmark_project_kernel,
                               vp=vp_flat, n_lm=n_lm, normalised=normalised)

    @jax.jit
    def forward(alpha, delta, omega, tau):
        """alpha (B,)/(B,1), delta (B,)/(B,1), omega (B,3) or (3,), tau (B,3) or (3,)."""
        a = alpha.reshape(-1, 1).astype(jnp.float32)
        d = delta.reshape(-1, 1).astype(jnp.float32)
        om = omega.reshape(-1, 3).astype(jnp.float32)
        t = tau.reshape(-1, 3).astype(jnp.float32)
        rad = jnp.deg2rad(om)
        scal = jnp.concatenate(
            [a, d, jnp.cos(rad), jnp.sin(rad), t, jnp.zeros_like(a)], axis=1)  # (B, 12)
        B = scal.shape[0]

        uv = pl.pallas_call(
            kernel,
            out_shape=jax.ShapeDtypeStruct((B, 2, lp), jnp.float32),
            grid_spec=pltpu.PrefetchScalarGridSpec(
                num_scalar_prefetch=0,
                grid=(B,),
                in_specs=[
                    pl.BlockSpec(memory_space=pltpu.MemorySpace.SMEM),   # scal (B, 12)
                    pl.BlockSpec(memory_space=pltpu.MemorySpace.VMEM),   # sig2
                    pl.BlockSpec(memory_space=pltpu.MemorySpace.VMEM),   # basis
                    pl.BlockSpec(memory_space=pltpu.MemorySpace.VMEM),   # mu
                ],
                out_specs=pl.BlockSpec((None, 2, lp), lambda b: (b, 0, 0)),
            ),
            compiler_params=pltpu.CompilerParams(
                dimension_semantics=("parallel",)),
        )(scal, sig2, basis, mu_lm)

        return jnp.transpose(uv[:, :, :n_lm], (0, 2, 1))      # (B, n_lm, 2)

    return forward


def training_forward(forward_fn, params):
    """The single-sample `Training.forward` equivalent (B=1 special case)."""
    out = forward_fn(params["alpha"], params["delta"],
                     params["omega"], params["tau"])
    return out[0]                                               # (68, 2)


# ----------------------------------------------------------------------------
# Pure-JAX reference: blends the FULL point cloud, builds the camera matrix
# with small matmuls, projects, then selects the 68-landmark subset.
# ----------------------------------------------------------------------------
def _matmul_hi(a, b):
    return jnp.matmul(a, b, precision=jax.lax.Precision.HIGHEST)


def _rotation_matrix(omega):
    rx, ry, rz = (jnp.deg2rad(omega[0]), jnp.deg2rad(omega[1]),
                  jnp.deg2rad(omega[2]))
    cx, sx = jnp.cos(rx), jnp.sin(rx)
    cy, sy = jnp.cos(ry), jnp.sin(ry)
    cz, sz = jnp.cos(rz), jnp.sin(rz)
    one, zero = jnp.float32(1.0), jnp.float32(0.0)
    Rx = jnp.array([[one, zero, zero], [zero, cx, -sx], [zero, sx, cx]],
                   dtype=jnp.float32)
    Ry = jnp.array([[cy, zero, sy], [zero, one, zero], [-sy, zero, cy]],
                   dtype=jnp.float32)
    Rz = jnp.array([[cz, -sz, zero], [sz, cz, zero], [zero, zero, one]],
                   dtype=jnp.float32)
    return _matmul_hi(Rz, _matmul_hi(Ry, Rx))


def build_camera_matrix(omega, tau, picture_shape, fovy=0.5, near=300.0, far=2000.0):
    R = _rotation_matrix(omega)
    T = jnp.eye(4, dtype=jnp.float32)
    T = T.at[:3, :3].set(R).at[:3, 3].set(tau.astype(jnp.float32))
    VP = jnp.asarray(build_viewport_perspective(picture_shape, fovy, near, far))
    return _matmul_hi(VP, T)


def _reference_forward(params, raw, picture_shape, normalised=False):
    alpha, delta, omega, tau = (params["alpha"], params["delta"],
                                params["omega"], params["tau"])
    n = raw["mu"].shape[1]
    g = (raw["mu"]
         + jnp.einsum("k,kcn->cn", alpha[0] * raw["sig_id"], raw["eid"])
         + jnp.einsum("k,kcn->cn", delta[0] * raw["sig_ex"], raw["eex"]))  # (3, N)
    cam_m = build_camera_matrix(omega, tau, picture_shape)
    gh = jnp.concatenate([g, jnp.ones((1, n), jnp.float32)], axis=0)
    p = _matmul_hi(cam_m, gh)
    uv = p[:2] / p[3:4]
    landmarks = uv.T[raw["subset"], :]                           # (68, 2)
    if normalised:
        mean = landmarks.mean(axis=0, keepdims=True)
        var = landmarks.var(axis=0, keepdims=True)
        landmarks = (landmarks - mean) / jnp.sqrt(var + 1e-5)
    return landmarks


if __name__ == "__main__":
    key = jax.random.PRNGKey(0)
    keys = jax.random.split(key, 10)

    # Synthetic "BFM" (replaces the h5py load): N vertices, 30 id / 20 exp comps.
    N, N_ID, N_EX = 512, 30, 20
    H, W = 16, 16                                    # picture shape (H, W, 3)
    mu = jax.random.normal(keys[0], (3, N), jnp.float32) * 50.0
    eid = jax.random.normal(keys[1], (N_ID, 3, N), jnp.float32)
    eex = jax.random.normal(keys[2], (N_EX, 3, N), jnp.float32)
    sig_id = jnp.abs(jax.random.normal(keys[3], (N_ID,), jnp.float32)) + 0.1
    sig_ex = jnp.abs(jax.random.normal(keys[4], (N_EX,), jnp.float32)) + 0.1
    subset = (jnp.arange(68, dtype=jnp.int32) * (N // 68)) % N   # synthetic .anl indices

    raw = {"mu": mu, "eid": eid, "eex": eex,
           "sig_id": sig_id, "sig_ex": sig_ex, "subset": subset}

    bfm_lm = build_landmark_model(mu, eid, eex, sig_id, sig_ex, subset, l_pad=128)

    fwd = {False: make_training_forward(bfm_lm, (H, W, 3), normalised=False),
           True: make_training_forward(bfm_lm, (H, W, 3), normalised=True)}

    # Module parameters (shapes per __init__: alpha (1,), delta (1,), omega (3,), tau (3,)).
    params = {
        "alpha": jnp.array([0.3], jnp.float32),
        "delta": jnp.array([-0.2], jnp.float32),
        "omega": jnp.array([10.0, -5.0, 3.0], jnp.float32),
        "tau": jnp.array([0.0, 0.0, -400.0], jnp.float32),
    }

    # 1) Single-sample (exact `Training.forward` semantics), with/without BatchNorm.
    for normalised in (False, True):
        out = jax.block_until_ready(training_forward(fwd[normalised], params))
        assert out.shape == (68, 2), out.shape
        ref = _reference_forward(params, raw, (H, W, 3), normalised=normalised)
        np.testing.assert_allclose(np.asarray(out), np.asarray(ref),
                                   rtol=1e-4, atol=2e-3)

    # 2) Batched: B parameter sets in ONE pallas_call (grid over B, "parallel").
    B = 4
    alphas = jax.random.normal(keys[5], (B,), jnp.float32) * 0.5
    deltas = jax.random.normal(keys[6], (B,), jnp.float32) * 0.5
    omegas = jax.random.normal(keys[7], (B, 3), jnp.float32) * 10.0
    taus = jnp.concatenate(
        [jax.random.normal(keys[8], (B, 2), jnp.float32) * 5.0,
         -400.0 + jax.random.normal(keys[9], (B, 1), jnp.float32) * 20.0], axis=1)

    for normalised in (False, True):
        out_b = jax.block_until_ready(fwd[normalised](alphas, deltas, omegas, taus))
        assert out_b.shape == (B, 68, 2), out_b.shape
        for i in range(B):
            p_i = {"alpha": alphas[i:i + 1], "delta": deltas[i:i + 1],
                   "omega": omegas[i], "tau": taus[i]}
            ref_i = _reference_forward(p_i, raw, (H, W, 3), normalised=normalised)
            np.testing.assert_allclose(np.asarray(out_b[i]), np.asarray(ref_i),
                                       rtol=1e-4, atol=2e-3)

    print("KERNEL_OK")
</pallas_src>

<mosaic_0001>
module attributes {stable_mosaic.version = 11 : i64} {
  func.func @_landmark_project_kernel(%arg0: i32, %arg1: memref<1x12xf32, #tpu.memory_space<smem>>, %arg2: memref<2x56xf32, #tpu.memory_space<vmem>>, %arg3: memref<56x384xf32, #tpu.memory_space<vmem>>, %arg4: memref<1x384xf32, #tpu.memory_space<vmem>>, %arg5: memref<1x2x128xf32, #tpu.memory_space<vmem>>) attributes {dimension_semantics = [#tpu.dimension_semantics<parallel>], iteration_bounds = array<i64: 1>, scalar_prefetch = 0 : i64, scratch_operands = 0 : i64, tpu.core_type = #tpu.core_type<tc>, window_params = [{transform_indices = @transform_0, window_bounds = array<i64: 1, 12>}, {pipeline_mode = #tpu.pipeline_mode<synchronous>, transform_indices = @transform_1, window_bounds = array<i64: 2, 56>}, {pipeline_mode = #tpu.pipeline_mode<synchronous>, transform_indices = @transform_2, window_bounds = array<i64: 56, 384>}, {pipeline_mode = #tpu.pipeline_mode<synchronous>, transform_indices = @transform_3, window_bounds = array<i64: 1, 384>}, {transform_indices = @transform_4, window_bounds = array<i64: 1, 2, 128>}]} {
    %0 = arith.index_cast %arg0 : i32 to index
    %c0 = arith.constant 0 : index
    %1 = memref.load %arg1[%0, %c0] : memref<1x12xf32, #tpu.memory_space<smem>>
    %2 = arith.index_cast %arg0 : i32 to index
    %c1 = arith.constant 1 : index
    %3 = memref.load %arg1[%2, %c1] : memref<1x12xf32, #tpu.memory_space<smem>>
    %4 = arith.index_cast %arg0 : i32 to index
    %c2 = arith.constant 2 : index
    %5 = memref.load %arg1[%4, %c2] : memref<1x12xf32, #tpu.memory_space<smem>>
    %6 = arith.index_cast %arg0 : i32 to index
    %c3 = arith.constant 3 : index
    %7 = memref.load %arg1[%6, %c3] : memref<1x12xf32, #tpu.memory_space<smem>>
    %8 = arith.index_cast %arg0 : i32 to index
    %c4 = arith.constant 4 : index
    %9 = memref.load %arg1[%8, %c4] : memref<1x12xf32, #tpu.memory_space<smem>>
    %10 = arith.index_cast %arg0 : i32 to index
    %c5 = arith.constant 5 : index
    %11 = memref.load %arg1[%10, %c5] : memref<1x12xf32, #tpu.memory_space<smem>>
    %12 = arith.index_cast %arg0 : i32 to index
    %c6 = arith.constant 6 : index
    %13 = memref.load %arg1[%12, %c6] : memref<1x12xf32, #tpu.memory_space<smem>>
    %14 = arith.index_cast %arg0 : i32 to index
    %c7 = arith.constant 7 : index
    %15 = memref.load %arg1[%14, %c7] : memref<1x12xf32, #tpu.memory_space<smem>>
    %16 = arith.index_cast %arg0 : i32 to index
    %c8 = arith.constant 8 : index
    %17 = memref.load %arg1[%16, %c8] : memref<1x12xf32, #tpu.memory_space<smem>>
    %18 = arith.index_cast %arg0 : i32 to index
    %c9 = arith.constant 9 : index
    %19 = memref.load %arg1[%18, %c9] : memref<1x12xf32, #tpu.memory_space<smem>>
    %20 = arith.index_cast %arg0 : i32 to index
    %c10 = arith.constant 10 : index
    %21 = memref.load %arg1[%20, %c10] : memref<1x12xf32, #tpu.memory_space<smem>>
    %22 = arith.mulf %9, %7 : f32
    %23 = arith.mulf %9, %13 : f32
    %24 = arith.mulf %23, %11 : f32
    %25 = arith.mulf %15, %5 : f32
    %26 = arith.subf %24, %25 : f32
    %27 = arith.mulf %9, %13 : f32
    %28 = arith.mulf %27, %5 : f32
    %29 = arith.mulf %15, %11 : f32
    %30 = arith.addf %28, %29 : f32
    %31 = arith.mulf %15, %7 : f32
    %32 = arith.mulf %15, %13 : f32
    %33 = arith.mulf %32, %11 : f32
    %34 = arith.mulf %9, %5 : f32
    %35 = arith.addf %33, %34 : f32
    %36 = arith.mulf %15, %13 : f32
    %37 = arith.mulf %36, %5 : f32
    %38 = arith.mulf %9, %11 : f32
    %39 = arith.subf %37, %38 : f32
    %cst = arith.constant 0.000000e+00 : f32
    %40 = arith.subf %cst, %13 : f32
    %41 = arith.mulf %7, %11 : f32
    %42 = arith.mulf %7, %5 : f32
    %c0_0 = arith.constant 0 : index
    %c0_1 = arith.constant 0 : index
    %43 = vector.load %arg2[%c0_0, %c0_1] : memref<2x56xf32, #tpu.memory_space<vmem>>, vector<1x56xf32>
    %44 = vector.broadcast %1 : f32 to vector<1x56xf32>
    %45 = arith.mulf %44, %43 : vector<1x56xf32>
    %c1_2 = arith.constant 1 : index
    %c0_3 = arith.constant 0 : index
    %46 = vector.load %arg2[%c1_2, %c0_3] : memref<2x56xf32, #tpu.memory_space<vmem>>, vector<1x56xf32>
    %47 = vector.broadcast %3 : f32 to vector<1x56xf32>
    %48 = arith.mulf %47, %46 : vector<1x56xf32>
    %49 = arith.addf %45, %48 : vector<1x56xf32>
    %c0_4 = arith.constant 0 : index
    %c0_5 = arith.constant 0 : index
    %50 = vector.load %arg4[%c0_4, %c0_5] : memref<1x384xf32, #tpu.memory_space<vmem>>, vector<1x384xf32>
    %c0_6 = arith.constant 0 : index
    %c0_7 = arith.constant 0 : index
    %51 = vector.load %arg3[%c0_6, %c0_7] : memref<56x384xf32, #tpu.memory_space<vmem>>, vector<56x384xf32>
    %cst_8 = arith.constant dense<0.000000e+00> : vector<1x384xf32>
    %52 = tpu.matmul %49, %51, %cst_8 {dimension_numbers = #tpu.dot_dimension_numbers<[1], [0], [0], [1], [0, 0, 1, 1], [], []>} : vector<1x56xf32>, vector<56x384xf32>, vector<1x384xf32> -> vector<1x384xf32>
    %53 = arith.addf %50, %52 : vector<1x384xf32>
    %54 = vector.extract_strided_slice %53 {offsets = [0, 0], sizes = [1, 128], strides = [1, 1]} : vector<1x384xf32> to vector<1x128xf32>
    %55 = vector.extract_strided_slice %53 {offsets = [0, 128], sizes = [1, 128], strides = [1, 1]} : vector<1x384xf32> to vector<1x128xf32>
    %56 = vector.extract_strided_slice %53 {offsets = [0, 256], sizes = [1, 128], strides = [1, 1]} : vector<1x384xf32> to vector<1x128xf32>
    %cst_9 = arith.constant 31.3305397 : f32
    %57 = arith.mulf %cst_9, %22 : f32
    %cst_10 = arith.constant 0.000000e+00 : f32
    %58 = arith.mulf %cst_10, %31 : f32
    %59 = arith.addf %57, %58 : f32
    %cst_11 = arith.constant -8.000000e+00 : f32
    %60 = arith.mulf %cst_11, %40 : f32
    %61 = arith.addf %59, %60 : f32
    %cst_12 = arith.constant 31.3305397 : f32
    %62 = arith.mulf %cst_12, %26 : f32
    %cst_13 = arith.constant 0.000000e+00 : f32
    %63 = arith.mulf %cst_13, %35 : f32
    %64 = arith.addf %62, %63 : f32
    %cst_14 = arith.constant -8.000000e+00 : f32
    %65 = arith.mulf %cst_14, %41 : f32
    %66 = arith.addf %64, %65 : f32
    %cst_15 = arith.constant 31.3305397 : f32
    %67 = arith.mulf %cst_15, %30 : f32
    %cst_16 = arith.constant 0.000000e+00 : f32
    %68 = arith.mulf %cst_16, %39 : f32
    %69 = arith.addf %67, %68 : f32
    %cst_17 = arith.constant -8.000000e+00 : f32
    %70 = arith.mulf %cst_17, %42 : f32
    %71 = arith.addf %69, %70 : f32
    %cst_18 = arith.constant 31.3305397 : f32
    %72 = arith.mulf %cst_18, %17 : f32
    %cst_19 = arith.constant 0.000000e+00 : f32
    %73 = arith.mulf %cst_19, %19 : f32
    %74 = arith.addf %72, %73 : f32
    %cst_20 = arith.constant -8.000000e+00 : f32
    %75 = arith.mulf %cst_20, %21 : f32
    %76 = arith.addf %74, %75 : f32
    %cst_21 = arith.constant 0.000000e+00 : f32
    %77 = arith.addf %76, %cst_21 : f32
    %cst_22 = arith.constant 0.000000e+00 : f32
    %78 = arith.mulf %cst_22, %22 : f32
    %cst_23 = arith.constant -31.3305397 : f32
    %79 = arith.mulf %cst_23, %31 : f32
    %80 = arith.addf %78, %79 : f32
    %cst_24 = arith.constant -8.000000e+00 : f32
    %81 = arith.mulf %cst_24, %40 : f32
    %82 = arith.addf %80, %81 : f32
    %cst_25 = arith.constant 0.000000e+00 : f32
    %83 = arith.mulf %cst_25, %26 : f32
    %cst_26 = arith.constant -31.3305397 : f32
    %84 = arith.mulf %cst_26, %35 : f32
    %85 = arith.addf %83, %84 : f32
    %cst_27 = arith.constant -8.000000e+00 : f32
    %86 = arith.mulf %cst_27, %41 : f32
    %87 = arith.addf %85, %86 : f32
    %cst_28 = arith.constant 0.000000e+00 : f32
    %88 = arith.mulf %cst_28, %30 : f32
    %cst_29 = arith.constant -31.3305397 : f32
    %89 = arith.mulf %cst_29, %39 : f32
    %90 = arith.addf %88, %89 : f32
    %cst_30 = arith.constant -8.000000e+00 : f32
    %91 = arith.mulf %cst_30, %42 : f32
    %92 = arith.addf %90, %91 : f32
    %cst_31 = arith.constant 0.000000e+00 : f32
    %93 = arith.mulf %cst_31, %17 : f32
    %cst_32 = arith.constant -31.3305397 : f32
    %94 = arith.mulf %cst_32, %19 : f32
    %95 = arith.addf %93, %94 : f32
    %cst_33 = arith.constant -8.000000e+00 : f32
    %96 = arith.mulf %cst_33, %21 : f32
    %97 = arith.addf %95, %96 : f32
    %cst_34 = arith.constant 0.000000e+00 : f32
    %98 = arith.addf %97, %cst_34 : f32
    %cst_35 = arith.constant 0.000000e+00 : f32
    %99 = arith.mulf %cst_35, %22 : f32
    %cst_36 = arith.constant 0.000000e+00 : f32
    %100 = arith.mulf %cst_36, %31 : f32
    %101 = arith.addf %99, %100 : f32
    %cst_37 = arith.constant -1.000000e+00 : f32
    %102 = arith.mulf %cst_37, %40 : f32
    %103 = arith.addf %101, %102 : f32
    %cst_38 = arith.constant 0.000000e+00 : f32
    %104 = arith.mulf %cst_38, %26 : f32
    %cst_39 = arith.constant 0.000000e+00 : f32
    %105 = arith.mulf %cst_39, %35 : f32
    %106 = arith.addf %104, %105 : f32
    %cst_40 = arith.constant -1.000000e+00 : f32
    %107 = arith.mulf %cst_40, %41 : f32
    %108 = arith.addf %106, %107 : f32
    %cst_41 = arith.constant 0.000000e+00 : f32
    %109 = arith.mulf %cst_41, %30 : f32
    %cst_42 = arith.constant 0.000000e+00 : f32
    %110 = arith.mulf %cst_42, %39 : f32
    %111 = arith.addf %109, %110 : f32
    %cst_43 = arith.constant -1.000000e+00 : f32
    %112 = arith.mulf %cst_43, %42 : f32
    %113 = arith.addf %111, %112 : f32
    %cst_44 = arith.constant 0.000000e+00 : f32
    %114 = arith.mulf %cst_44, %17 : f32
    %cst_45 = arith.constant 0.000000e+00 : f32
    %115 = arith.mulf %cst_45, %19 : f32
    %116 = arith.addf %114, %115 : f32
    %cst_46 = arith.constant -1.000000e+00 : f32
    %117 = arith.mulf %cst_46, %21 : f32
    %118 = arith.addf %116, %117 : f32
    %cst_47 = arith.constant 0.000000e+00 : f32
    %119 = arith.addf %118, %cst_47 : f32
    %120 = vector.broadcast %61 : f32 to vector<1x128xf32>
    %121 = arith.mulf %120, %54 : vector<1x128xf32>
    %122 = vector.broadcast %66 : f32 to vector<1x128xf32>
    %123 = arith.mulf %122, %55 : vector<1x128xf32>
    %124 = arith.addf %121, %123 : vector<1x128xf32>
    %125 = vector.broadcast %71 : f32 to vector<1x128xf32>
    %126 = arith.mulf %125, %56 : vector<1x128xf32>
    %127 = arith.addf %124, %126 : vector<1x128xf32>
    %128 = vector.broadcast %77 : f32 to vector<1x128xf32>
    %129 = arith.addf %127, %128 : vector<1x128xf32>
    %130 = vector.broadcast %82 : f32 to vector<1x128xf32>
    %131 = arith.mulf %130, %54 : vector<1x128xf32>
    %132 = vector.broadcast %87 : f32 to vector<1x128xf32>
    %133 = arith.mulf %132, %55 : vector<1x128xf32>
    %134 = arith.addf %131, %133 : vector<1x128xf32>
    %135 = vector.broadcast %92 : f32 to vector<1x128xf32>
    %136 = arith.mulf %135, %56 : vector<1x128xf32>
    %137 = arith.addf %134, %136 : vector<1x128xf32>
    %138 = vector.broadcast %98 : f32 to vector<1x128xf32>
    %139 = arith.addf %137, %138 : vector<1x128xf32>
    %140 = vector.broadcast %103 : f32 to vector<1x128xf32>
    %141 = arith.mulf %140, %54 : vector<1x128xf32>
    %142 = vector.broadcast %108 : f32 to vector<1x128xf32>
    %143 = arith.mulf %142, %55 : vector<1x128xf32>
    %144 = arith.addf %141, %143 : vector<1x128xf32>
    %145 = vector.broadcast %113 : f32 to vector<1x128xf32>
    %146 = arith.mulf %145, %56 : vector<1x128xf32>
    %147 = arith.addf %144, %146 : vector<1x128xf32>
    %148 = vector.broadcast %119 : f32 to vector<1x128xf32>
    %149 = arith.addf %147, %148 : vector<1x128xf32>
    %150 = tpu.iota {dimensions = array<i32: 1>} : vector<1x128xi32>
    %c68_i32 = arith.constant 68 : i32
    %151 = vector.broadcast %c68_i32 : i32 to vector<1x128xi32>
    %152 = arith.cmpi slt, %150, %151 : vector<1x128xi32>
    %cst_48 = arith.constant 1.000000e+00 : f32
    %153 = vector.broadcast %cst_48 : f32 to vector<1x128xf32>
    %154 = arith.select %152, %149, %153 : vector<1x128xi1>, vector<1x128xf32>
    %155 = tpu.reciprocal %154 : vector<1x128xf32> -> vector<1x128xf32>
    %156 = arith.mulf %129, %155 : vector<1x128xf32>
    %157 = arith.mulf %139, %155 : vector<1x128xf32>
    %c0_49 = arith.constant 0 : index
    %c0_50 = arith.constant 0 : index
    %c0_51 = arith.constant 0 : index
    %158 = vector.load %arg5[%c0_49, %c0_50, %c0_51] : memref<1x2x128xf32, #tpu.memory_space<vmem>>, vector<1x1x128xf32>
    %159 = vector.shape_cast %158 : vector<1x1x128xf32> to vector<1x128xf32>
    %160 = vector.shape_cast %156 : vector<1x128xf32> to vector<1x1x128xf32>
    tpu.vector_store %arg5[%c0_49, %c0_50, %c0_51], %160 {strides = array<i32>} : memref<1x2x128xf32, #tpu.memory_space<vmem>>, vector<1x1x128xf32>,
    %c0_52 = arith.constant 0 : index
    %c1_53 = arith.constant 1 : index
    %c0_54 = arith.constant 0 : index
    %161 = vector.load %arg5[%c0_52, %c1_53, %c0_54] : memref<1x2x128xf32, #tpu.memory_space<vmem>>, vector<1x1x128xf32>
    %162 = vector.shape_cast %161 : vector<1x1x128xf32> to vector<1x128xf32>
    %163 = vector.shape_cast %157 : vector<1x128xf32> to vector<1x1x128xf32>
    tpu.vector_store %arg5[%c0_52, %c1_53, %c0_54], %163 {strides = array<i32>} : memref<1x2x128xf32, #tpu.memory_space<vmem>>, vector<1x1x128xf32>,
    return
  }
  func.func @transform_0(%arg0: i32) -> (i32, i32) {
    %c0_i32 = arith.constant 0 : i32
    %c0_i32_0 = arith.constant 0 : i32
    %c0_i32_1 = arith.constant 0 : i32
    return %c0_i32, %c0_i32_0 : i32, i32
  }
  func.func @transform_1(%arg0: i32) -> (i32, i32) {
    %c0_i32 = arith.constant 0 : i32
    %c0_i32_0 = arith.constant 0 : i32
    %c0_i32_1 = arith.constant 0 : i32
    return %c0_i32, %c0_i32_0 : i32, i32
  }
  func.func @transform_2(%arg0: i32) -> (i32, i32) {
    %c0_i32 = arith.constant 0 : i32
    %c0_i32_0 = arith.constant 0 : i32
    %c0_i32_1 = arith.constant 0 : i32
    return %c0_i32, %c0_i32_0 : i32, i32
  }
  func.func @transform_3(%arg0: i32) -> (i32, i32) {
    %c0_i32 = arith.constant 0 : i32
    %c0_i32_0 = arith.constant 0 : i32
    %c0_i32_1 = arith.constant 0 : i32
    return %c0_i32, %c0_i32_0 : i32, i32
  }
  func.func @transform_4(%arg0: i32) -> (i32, i32, i32) {
    %c0_i32 = arith.constant 0 : i32
    %c0_i32_0 = arith.constant 0 : i32
    %c0_i32_1 = arith.constant 0 : i32
    return %arg0, %c0_i32, %c0_i32_0 : i32, i32, i32
  }
}

</mosaic_0001>

<bundles_post_ra>
// kernel: forward.1
= control target key start
LH: loop header
LB: loop body
LE: loop exit
PB: predicated region body
PF: predicated region fallthrough
CT: control target
= control target key end

     0   :  { %s647_s0 = inlined_call_operand.vmem [shape: f32[1,12], index: 0, kind: input, shape index: {}]   ;;  %s648_s1 = inlined_call_operand.vmem [shape: f32[2,56], index: 1, kind: input, shape index: {}]   ;;  %s649_s2 = inlined_call_operand.hbm [shape: f32[56,384], index: 2, kind: input, shape index: {}]   ;;  %s650_s3 = inlined_call_operand.vmem [shape: f32[1,384], index: 3, kind: input, shape index: {}]   ;;  %s651_s4 = inlined_call_operand.vmem [shape: f32[1,2,128], index: 4, kind: output, shape index: {}]  }
   0x1   :  { %662 = sst [smem:[#allocation11_spill]] %s651_s4 }
   0x2   :  { %9 = vsyncpa [#allocation4], 0  ;;  %s17_s17 = sshll.u32 %s647_s0, 4  ;;  %s18_s17 = int_to_ptr.vmem [resolvable:$true] %s17_s17 }
   0x3   :  { %10 = vsyncpa [#allocation3], 0  ;;  %s434_s18 = scalar_lea.vmem %s18_s17, 16  ;;  %p439_p1 = scmp.lt.s32.totalorder %s18_s17, %s18_s17 }
   0x4   :  { %p435_p0 = scmp.ne.s32.totalorder %s18_s17, %s434_s18  ;;  %p440_p2 = scmp.lt.s32.totalorder %s434_s18, %s434_s18 }
   0x6   :  { %p441_p3 = por %p440_p2, %p439_p1 }
   0x8   :  { %p442_p4 = pnand %p441_p3, %p435_p0 }
   0xa   :  { %445 = shalt.err (!%p442_p4)
}
   0xb   :  { %s470_s19 = smov [#allocation2]   ;;  %s471_s20 = smov [#allocation5]  }
   0xc   :  { %20 = dma.vmem_to_smem %s18_s17, 16, %s470_s19, [#allocation4]  }
   0xd   :  { %s28_s21 = sshll.u32 %s471_s20, 4  ;;  %s29_s21 = int_to_ptr.vmem [resolvable:$true] %s28_s21 }
   0xe   :  { %s454_s22 = scalar_lea.vmem %s29_s21, 2688  ;;  %p459_p6 = scmp.lt.s32.totalorder %s29_s21, %s29_s21 }
   0xf   :  { %p455_p5 = scmp.ne.s32.totalorder %s29_s21, %s454_s22  ;;  %p460_p7 = scmp.lt.s32.totalorder %s454_s22, %s454_s22 }
  0x11   :  { %p461_p8 = por %p460_p7, %p459_p6 }
  0x13   :  { %p462_p9 = pnand %p461_p8, %p455_p5 }
  0x15   :  { %465 = shalt.err (!%p462_p9)
}
  0x16   :  { %s472_s0 = smov 384   ;;  %s473_s23 = smov 24  }
  0x17   :  { %34 = dma.hbm_to_vmem [thread:$0]  %s649_s2, 2688, %s29_s21, [#allocation3], %s472_s0, %s472_s0, %s473_s23  }
  0x18   :  { %466 = dma.done.wait [#allocation4], 16  }
  0x19   :  { %467 = vsyncadd [#allocation4], 4294967280 }
  0x1a   :  { %468 = dma.done.wait [#allocation3], 2688  }
  0x1b   :  { %469 = vsyncadd [#allocation3], 4294964608 }
  0x1c   :  { %43 = sfence }
  0x1d   :  { %v112_v0 = vld [vmem:[#allocation5 + $0x98] sm:$0xff]  ;;  %v111_v1 = vld [vmem:[#allocation5 + $0x90] sm:$0xff]  ;;  %v109_v2 = vld [vmem:[#allocation5 + $0x80] sm:$0xff]  ;;  %s508_s26 = sld [smem:[#allocation2]]  ;;  %v474_v3 = vmov 0.0   ;;  %vm114_vm0 = vcmask 457728   ;;  %v266_v31 = vlaneseq }
  0x1e   :  { %136 = vmatprep.subr.mxu0 %v112_v0  ;;  %408 = vmatprep.subr.mxu1 %v474_v3  ;;  %v108_v4 = vld [vmem:[#allocation5 + $0x78] sm:$0xff]  ;;  %v113_v5 = vld [vmem:[#allocation5 + $0xa0] sm:$0xff]  ;;  %s510_s27 = sld [smem:[#allocation2 + $0x1]]  ;;  %v106_v6 = vld [vmem:[#allocation5 + $0x68] sm:$0xff]  ;;  %vm475_vm1 = vmmov 0  }
  0x1f   :  { %137 = vmatpush1.msra.mxu0 %v111_v1  ;;  %409 = vmatpush3.msra.mxu1 %v113_v5  ;;  %v110_v7 = vld [vmem:[#allocation5 + $0x88] sm:$0xff]  ;;  %v105_v8 = vld [vmem:[#allocation5 + $0x60] sm:$0xff]  ;;  %v107_v9 = vld [vmem:[#allocation5 + $0x70] sm:$0xff]  ;;  %s522_s5 = sld [smem:[#allocation2 + $0x6]]  ;;  %v476_v29 = vmov 1966171168  }
  0x20   :  { %138 = vmatprep.subr.mxu0 %v109_v2  ;;  %410 = vmatprep.subr.mxu1 %v474_v3  ;;  %v103_v10 = vld [vmem:[#allocation5 + $0x50] sm:$0xff]  ;;  %v102_v11 = vld [vmem:[#allocation5 + $0x48] sm:$0xff]  ;;  %v104_v12 = vld [vmem:[#allocation5 + $0x58] sm:$0xff]  ;;  %s524_s6 = sld [smem:[#allocation2 + $0x2]]  ;;  %v264_v30 = vunpack.c.l.s4 %v476_v29  ;;  %v267_v33 = vshrl.u32 %v266_v31, 7  ;;  %v374_v53 = vand.u32 127, %v266_v31 }
  0x21   :  { %139 = vmatpush1.msra.mxu0 %v108_v4  ;;  %411 = vmatpush3.msra.mxu1 %v110_v7  ;;  %v100_v13 = vld [vmem:[#allocation5 + $0x38] sm:$0xff]  ;;  %v85_v14 = vld [vmem:[%s648_s1] sm:$0x1]  ;;  %v99_v16 = vld [vmem:[#allocation5 + $0x30] sm:$0xff]  ;;  %s390_s7 = sld [smem:[#allocation2 + $0x3]] }
  0x22   :  { %140 = vmatprep.subr.mxu0 %v106_v6  ;;  %412 = vmatprep.subr.mxu1 %v474_v3  ;;  %v101_v17 = vld [vmem:[#allocation5 + $0x40] sm:$0xff]  ;;  %v96_v23 = vld [vmem:[#allocation5 + $0x18] sm:$0xff]  ;;  %v94_v24 = vld [vmem:[#allocation5 + $0x8] sm:$0xff]  ;;  %s526_s8 = sld [smem:[#allocation2 + $0x5]]  ;;  %v265_v32 = vunpack.c.0.s8 %v264_v30  ;;  %vm375_vm2 = vcmp.lt.s32.totalorder %v374_v53, 68 }
  0x23   :  { %141 = vmatpush1.msra.mxu0 %v105_v8  ;;  %413 = vmatpush3.msra.mxu1 %v107_v9  ;;  %v86_v15 = vstv %s508_s26  ;;  %v88_v19 = vld [vmem:[%s648_s1 + $0x1] sm:$0x1]  ;;  %v98_v25 = vld [vmem:[#allocation5 + $0x28] sm:$0xff]  ;;  %v95_v28 = vld [vmem:[#allocation5 + $0x10] sm:$0xff]  ;;  %s520_s1 = sld [smem:[#allocation2 + $0x4]] }
  0x24   :  { %142 = vmatprep.subr.mxu0 %v103_v10  ;;  %414 = vmatprep.subr.mxu1 %v474_v3  ;;  %v87_v18 = vmul.f32 %v86_v15, %v85_v14  ;;  %v89_v20 = vstv %s510_s27  ;;  %v97_v21 = vld [vmem:[#allocation5 + $0x20] sm:$0xff]  ;;  %s528_s9 = sld [smem:[#allocation2 + $0x7]]  ;;  %v268_v34 = vsub.s32 %v265_v32, %v267_v33 }
  0x25   :  { %143 = vmatpush1.msra.mxu0 %v102_v11  ;;  %415 = vmatpush3.msra.mxu1 %v104_v12  ;;  %v90_v22 = vmul.f32 %v89_v20, %v88_v19  ;;  %v93_v26 = vld [vmem:[#allocation5] sm:$0xff]  ;;  %s549_s21 = sld [smem:[#allocation2 + $0x9]] }
  0x26   :  { %144 = vmatprep.subr.mxu0 %v100_v13  ;;  %416 = vmatprep.subr.mxu1 %v474_v3  ;;  %s82_s0 = ssub.f32 0.0, %s522_s5  ;;  %v92_v43 = vld [vmem:[%s650_s3] sm:$0x7] }
  0x27   :  { %145 = vmatpush1.msra.mxu0 %v99_v16  ;;  %417 = vmatpush3.msra.mxu1 %v101_v17  ;;  %v91_v27 = vadd.f32 %v90_v22, %v87_v18  ;;  %s561_s25 = smul.f32 %s390_s7, %s524_s6 }
  0x28   :  { %146 = vmatprep.subr.mxu0 %v97_v21  ;;  %418 = vmatprep.subr.mxu1 %v474_v3  ;;  %s556_s23 = smul.f32 %s526_s8, %s390_s7 }
  0x29   :  { %147 = vmatpush1.msra.mxu0 %v96_v23  ;;  %182 = vmatprep.mubr.f32.mxu0 %v474_v3  ;;  %s67_s10 = smul.f32 %s522_s5, %s520_s1  ;;  %663 = sst [smem:[#allocation8_spill]] %s561_s25 }
  0x2a   :  { %148 = vmatprep.subr.mxu0 %v94_v24  ;;  %419 = vmatpush3.msra.mxu1 %v98_v25  ;;  %s77_s11 = smul.f32 %s520_s1, %s524_s6 }
  0x2b   :  { %149 = vmatpush1.msra.mxu0 %v93_v26  ;;  %420 = vmatprep.subr.mxu1 %v474_v3  ;;  %s535_s12 = smul.f32 %s520_s1, %s390_s7 }
  0x2c   :  { %398 = vmatmul.mubr.msk.f32.vlgmr.msra.gmra.mxu0 %vm114_vm0, %v91_v27  ;;  %421 = vmatpush3.msra.mxu1 %v95_v28  ;;  %s68_s13 = smul.f32 %s526_s8, %s67_s10 }
  0x2d   :  { %422 = vmatprep.mubr.msk.f32.mxu1 %vm475_vm1, %v474_v3  ;;  %s69_s14 = smul.f32 %s528_s9, %s524_s6 }
  0x2e   :  { %423 = vmatmul.mubr.msk.f32.vlgmr.msra.gmra.mxu1 %vm114_vm0, %v91_v27  ;;  %s75_s15 = smul.f32 %s528_s9, %s522_s5  ;;  %s575_s5 = sld [smem:[#allocation2 + $0x8]] }
  0x2f   :  { %s71_s16 = smul.f32 %s524_s6, %s67_s10  ;;  %s568_s28 = ssub.f32 %s68_s13, %s69_s14 }
  0x30   :  { %s72_s17 = smul.f32 %s528_s9, %s526_s8 }
  0x31   :  { %s80_s18 = smul.f32 %s526_s8, %s520_s1 }
  0x32   :  { %s76_s19 = smul.f32 %s526_s8, %s75_s15  ;;  %s572_s30 = sadd.f32 %s72_s17, %s71_s16 }
  0x33   :  { %s79_s20 = smul.f32 %s524_s6, %s75_s15 }
  0x34   :  { %s552_s22 = smul.f32 %s528_s9, %s390_s7  ;;  %s558_s24 = sadd.f32 %s77_s11, %s76_s19 }
  0x35   :  { %s564_s26 = ssub.f32 %s79_s20, %s80_s18  ;;  %s287_s27 = smul.f32 31.33054, %s535_s12 }
  0x36   :  { %s288_s2 = smul.f32 0.0, %s552_s22  ;;  %s580_s9 = sld [smem:[#allocation2 + $0xa]] }
  0x37   :  { %s570_s29 = smul.f32 -8.0, %s82_s0 }
  0x38   :  { %s654_s1 = smul.f32 0.0, %s558_s24  ;;  %s583_s11 = sadd.f32 %s288_s2, %s287_s27 }
  0x39   :  { %664 = sst [smem:[#allocation9_spill]] %s570_s29  ;;  %s657_s6 = smul.f32 0.0, %s564_s26 }
  0x3a   :  { %s653_s7 = smul.f32 0.0, %s535_s12  ;;  %665 = sst [smem:[#allocation10_spill]] %s583_s11 }
  0x3b   :  { %s652_s8 = smul.f32 0.0, %s568_s28 }
  0x3c   :  { %s656_s10 = smul.f32 0.0, %s572_s30  ;;  %s325_s14 = sadd.f32 %s653_s7, %s288_s2 }
  0x3d   :  { %s326_s15 = smul.f32 -1.0, %s82_s0  ;;  %s328_s16 = sadd.f32 %s652_s8, %s654_s1 }
  0x3e   :  { %s329_s17 = smul.f32 -1.0, %s556_s23  ;;  %s331_s18 = sadd.f32 %s656_s10, %s657_s6 }
  0x3f   :  { %s332_s19 = smul.f32 -1.0, %s561_s25  ;;  %s327_s7 = sadd.f32 %s326_s15, %s325_s14 }
  0x40   :  { %s320_s0 = smul.f32 0.0, %s575_s5  ;;  %s330_s13 = sadd.f32 %s329_s17, %s328_s16 }
  0x41   :  { %s292_s8 = smul.f32 31.33054, %s568_s28  ;;  %s333_s10 = sadd.f32 %s332_s19, %s331_s18  ;;  %v363_v47 = vstv %s327_s7 }
  0x42   :  { %s309_s1 = smul.f32 -31.33054, %s552_s22  ;;  %s669_s15 = sld [smem:[#allocation8_spill]]  ;;  %v365_v48 = vstv %s330_s13 }
  0x43   :  { %s313_s4 = smul.f32 -31.33054, %s558_s24  ;;  %s670_s22 = sld [smem:[#allocation9_spill]]  ;;  %v368_v50 = vstv %s333_s10 }
  0x44   :  { %s666_s6 = smul.f32 0.0, %s549_s21 }
  0x45   :  { %s335_s20 = smul.f32 -1.0, %s580_s9 }
  0x46   :  { %s334_s25 = sadd.f32 %s320_s0, %s666_s6  ;;  %s667_s11 = smul.f32 0.0, %s558_s24 }
  0x47   :  { %s295_s2 = smul.f32 -8.0, %s556_s23 }
  0x48   :  { %s294_s29 = sadd.f32 %s667_s11, %s292_s8  ;;  %s297_s27 = smul.f32 31.33054, %s572_s30 }
  0x49   :  { %s668_s3 = smul.f32 0.0, %s535_s12  ;;  %s336_s6 = sadd.f32 %s335_s20, %s334_s25 }
  0x4a   :  { %s671_s16 = smul.f32 0.0, %s568_s28  ;;  %s296_s24 = sadd.f32 %s295_s2, %s294_s29 }
  0x4b   :  { %s618_s14 = sadd.f32 %s309_s1, %s668_s3  ;;  %s317_s23 = smul.f32 -31.33054, %s564_s26  ;;  %v371_v56 = vstv %s336_s6 }
  0x4c   :  { %s314_s17 = sadd.f32 %s313_s4, %s671_s16  ;;  %s672_s12 = smul.f32 0.0, %s564_s26  ;;  %v340_v58 = vstv %s296_s24 }
  0x4d   :  { %s673_s8 = sld [smem:[#allocation10_spill]]  ;;  %s300_s4 = smul.f32 -8.0, %s669_s15 }
  0x4e   :  { %s299_s1 = sadd.f32 %s672_s12, %s297_s27  ;;  %s674_s25 = smul.f32 0.0, %s572_s30 }
  0x4f   :  { %s315_s7 = sadd.f32 %s314_s17, %s295_s2  ;;  %s302_s10 = smul.f32 31.33054, %s575_s5 }
  0x50   :  { %s311_s28 = sadd.f32 %s618_s14, %s670_s22  ;;  %s321_s11 = smul.f32 -31.33054, %s549_s21 }
  0x51   :  { %s318_s29 = sadd.f32 %s317_s23, %s674_s25  ;;  %v355_v59 = vstv %s315_s7  ;;  %s676_s19 = smul.f32 0.0, %s549_s21 }
  0x52   :  { %s301_s26 = sadd.f32 %s300_s4, %s299_s1  ;;  %v353_v62 = vstv %s311_s28  ;;  %s305_s2 = smul.f32 -8.0, %s580_s9 }
  0x53   :  { %s319_s13 = sadd.f32 %s318_s29, %s300_s4 }
  0x54   :  { %s675_s18 = sadd.f32 %s670_s22, %s673_s8  ;;  %v346_v4 = vstv %s301_s26 }
  0x55   :  { %s304_s20 = sadd.f32 %s676_s19, %s302_s10  ;;  %v358_v5 = vstv %s319_s13 }
  0x56   :  { %v338_v61 = vstv %s675_s18  ;;  %s322_s30 = sadd.f32 %s321_s11, %s320_s0 }
  0x57   :  { %s306_s27 = sadd.f32 %s305_s2, %s304_s20 }
  0x58   :  { %s323_s3 = sadd.f32 %s322_s30, %s305_s2 }
  0x59   :  { %v351_v12 = vstv %s306_s27  ;;  %s677_s9 = sld [smem:[#allocation11_spill]] }
  0x5a   :  { %v361_v13 = vstv %s323_s3 }
  0xec   :  { %v184_v35 = vpop.f32.mrf.mxu0 }
  0xee   :  { %v186_v36 = vpop.f32.mrf.mxu0  ;;  %v255_v37 = vpop.f32.mrf.mxu1 }
  0xef   :  { %v262_v38 = vcombine.low %v184_v35, %v186_v36  ;;  %v276_v39 = vrot.slane %v255_v37, %v268_v34 }
  0xf0   :  { %v424_v40 = vpop.f32.mrf.mxu1 }
  0xf1   :  { %v269_v41 = vrot.slane %v262_v38, %v268_v34 }
  0xf3   :  { %v277_v42 = vcombine.low %v269_v41, %v276_v39 }
  0xf5   :  { %v284_v44 = vrot.slane %v277_v42, %v268_v34 }
  0xf7   :  { %v286_v45 = vadd.f32 %v284_v44, %v92_v43 }
  0xf9   :  { %v342_v46 = vrot.slane %v286_v45, 1  ;;  %v347_v49 = vrot.slane %v286_v45, 2  ;;  %v364_v51 = vmul.f32 %v363_v47, %v286_v45  ;;  %v339_v2 = vmul.f32 %v338_v61, %v286_v45 }
  0xfa   :  { %v354_v3 = vmul.f32 %v353_v62, %v286_v45 }
  0xfb   :  { %v366_v52 = vmul.f32 %v365_v48, %v342_v46  ;;  %v369_v55 = vmul.f32 %v368_v50, %v347_v49  ;;  %v344_v0 = vmul.f32 %v342_v46, %v340_v58  ;;  %v356_v1 = vmul.f32 %v355_v59, %v342_v46 }
  0xfc   :  { %v349_v8 = vmul.f32 %v347_v49, %v346_v4  ;;  %v359_v9 = vmul.f32 %v358_v5, %v347_v49 }
  0xfd   :  { %v367_v54 = vadd.f32 %v366_v52, %v364_v51  ;;  %v345_v6 = vadd.f32 %v344_v0, %v339_v2  ;;  %v357_v7 = vadd.f32 %v356_v1, %v354_v3 }
  0xff   :  { %v370_v57 = vadd.f32 %v369_v55, %v367_v54  ;;  %v350_v10 = vadd.f32 %v349_v8, %v345_v6  ;;  %v360_v11 = vadd.f32 %v359_v9, %v357_v7 }
 0x101   :  { %v372_v60 = vadd.f32 %v371_v56, %v370_v57  ;;  %v352_v14 = vadd.f32 %v351_v12, %v350_v10  ;;  %v362_v15 = vadd.f32 %v361_v13, %v360_v11 }
 0x103   :  { %v376_v63 = vsel %vm375_vm2, %v372_v60, 1.0 }
 0x104   :  { %432 = vrcp.f32 %v376_v63 }
 0x111   :  { %v433_v16 = vpop.eup %432 }
 0x112   :  { %v378_v17 = vmul.f32 %v433_v16, %v352_v14  ;;  %v379_v18 = vmul.f32 %v433_v16, %v362_v15 }
 0x114   :  { %380 = vst [vmem:[%s677_s9] sm:$0x1] %v378_v17  ;;  %381 = vst [vmem:[%s677_s9 + $0x1] sm:$0x1] %v379_v18 }
 0x115   :  { %386 = vsyncpa [#allocation3], 1 }
 0x116   :  { %387 = vsyncpa [#allocation4], 1 }

</bundles_post_ra>
